<compile_context>
chip_gen: v7x
topology: tpu7x:2x2x1
jax: 0.10.0
libtpu: 0.0.40
codegen_flags: <defaults>
</compile_context>

<pallas_src>
import jax
import jax.numpy as jnp
from jax import lax
from jax.experimental import pallas as pl
from jax.experimental.pallas import tpu as pltpu

_LANE = 128


def _round_up(n, m):
    return ((n + m - 1) // m) * m


def gail_disc_kernel(x_ref, w1_ref, b1_ref, w2_ref, b2_ref, w3_ref, b3_ref, o_ref):
    """Fused 3-layer MLP + sigmoid on one batch tile (batch on the lane axis).

    x_ref  : (Bt, I)        f32   natural-layout input tile
    w1_ref : (H_pad, I)     bf16  resident
    b1_ref : (H_pad, 1)     f32
    w2_ref : (H_pad, H_pad) bf16  resident
    b2_ref : (H_pad, 1)     f32
    w3_ref : (H_pad, 1)     f32   final-layer weight as a column
    b3_ref : (1, 1)         f32   scalar in SMEM
    o_ref  : (1, Bt)        f32   lane-dense output row
    """
    # Layer 1: contract x's feature dim directly (== W1 @ x^T), so the batch
    # lands on the lane axis without any host-side transpose.  bf16 MXU
    # operands, f32 accumulation.
    x_bf = x_ref[...].astype(jnp.bfloat16)                       # (Bt, I)
    h1 = lax.dot_general(
        w1_ref[...], x_bf,
        dimension_numbers=(((1,), (1,)), ((), ())),
        preferred_element_type=jnp.float32)                      # (H_pad, Bt)
    # Fused bias + ReLU + bf16 cast: h1 only ever feeds the layer-2 MXU.
    h1 = jnp.maximum(h1 + b1_ref[...], 0.0).astype(jnp.bfloat16)

    # Layer 2: (H_pad, H_pad) @ (H_pad, Bt) -> (H_pad, Bt), f32 accumulate.
    h2 = jnp.dot(w2_ref[...], h1, preferred_element_type=jnp.float32)
    h2 = jnp.maximum(h2 + b2_ref[...], 0.0)

    # Layer 3: output width 1 -> VPU multiply + sublane reduce; result is a
    # lane-dense (1, Bt) row.  Kept in f32 (v5e has no bf16 VPU path).
    logit = jnp.sum(h2 * w3_ref[...], axis=0, keepdims=True) + b3_ref[0, 0]
    o_ref[...] = jax.nn.sigmoid(logit).astype(o_ref.dtype)


def prepare_params(params):
    """Pad hidden dim to the 128 grain and cast MXU weights to bf16.

    Call ONCE and reuse the result across forward calls (hoisted out of the
    hot path so weights are not re-padded / re-cast every RL step).
    Padding is mathematically inert: padded b1/b2/w3 entries are zero, so the
    padded hidden rows stay exactly zero through ReLU and contribute nothing.
    """
    hidden_dim, input_dim = params["w1"].shape
    h_pad = _round_up(hidden_dim, _LANE)

    def pad2(a, rows, cols):
        return jnp.zeros((rows, cols), a.dtype).at[: a.shape[0], : a.shape[1]].set(a)

    kp = {
        "w1": pad2(params["w1"], h_pad, input_dim).astype(jnp.bfloat16),        # (H_pad, I)
        "b1": pad2(params["b1"].reshape(-1, 1), h_pad, 1).astype(jnp.float32),  # (H_pad, 1)
        "w2": pad2(params["w2"], h_pad, h_pad).astype(jnp.bfloat16),            # (H_pad, H_pad)
        "b2": pad2(params["b2"].reshape(-1, 1), h_pad, 1).astype(jnp.float32),  # (H_pad, 1)
        "w3": pad2(params["w3"].T, h_pad, 1).astype(jnp.float32),               # (H_pad, 1)
        "b3": params["b3"].reshape(1, 1).astype(jnp.float32),                   # SMEM scalar
    }
    return kp, h_pad, input_dim


def _pick_block_b(batch, h_pad, input_dim):
    """Batch-tile width: big enough to amortize per-grid-step overhead, small
    enough that activation slabs + single-buffered weights fit v7x VMEM, and
    >= 2 tiles for realistic batches so v7x's 2 TensorCores both get work."""
    # Per-column VMEM cost: h1 f32 + h1 bf16 + h2 f32 + layer-3 temp (~16 B/row
    # of h_pad) plus the double-buffered f32 x tile column and output.
    per_col = h_pad * 16 + input_dim * 8 + 16
    cap = max(_LANE, ((12 << 20) // per_col) // _LANE * _LANE)
    cap = min(cap, 4096)
    if batch <= min(256, cap):
        return batch                      # single exact tile, zero padding
    return min(cap, max(_LANE, _round_up(pl.cdiv(batch, 2), _LANE)))


def gail_discriminator(x, kernel_params, h_pad, *, block_b=None):
    """x: [B, input_dim] float32 (natural layout, no host pre-pass).
    kernel_params/h_pad: output of prepare_params (call once, reuse)."""
    B, input_dim = x.shape
    kp = kernel_params
    assert kp["w1"].shape == (h_pad, input_dim), kp["w1"].shape

    if block_b is None:
        block_b = _pick_block_b(B, h_pad, input_dim)
    num_tiles = pl.cdiv(B, block_b)

    const = lambda i: (0, 0)  # resident operands: same block every grid step

    def build(single_buffer_weights):
        if single_buffer_weights:
            resident = lambda shape: pl.BlockSpec(shape, const,
                                                  pipeline_mode=pl.Buffered(1))
        else:
            resident = lambda shape: pl.BlockSpec(shape, const)
        return pl.pallas_call(
            gail_disc_kernel,
            out_shape=jax.ShapeDtypeStruct((1, B), jnp.float32),
            grid_spec=pltpu.PrefetchScalarGridSpec(
                num_scalar_prefetch=0,
                grid=(num_tiles,),
                in_specs=[
                    pl.BlockSpec((block_b, input_dim), lambda i: (i, 0)),  # x tile
                    resident((h_pad, input_dim)),                          # w1 (bf16)
                    resident((h_pad, 1)),                                  # b1
                    resident((h_pad, h_pad)),                              # w2 (bf16)
                    resident((h_pad, 1)),                                  # b2
                    resident((h_pad, 1)),                                  # w3 column
                    pl.BlockSpec(memory_space=pltpu.MemorySpace.SMEM),     # b3 scalar
                ],
                out_specs=pl.BlockSpec((1, block_b), lambda i: (0, i)),    # lane-dense
            ),
            compiler_params=pltpu.CompilerParams(
                dimension_semantics=("parallel",),   # batch tiles shard across TCs
                vmem_limit_bytes=32 * 1024 * 1024,   # sized for v7x (64 MiB physical)
            ),
        )(x, kp["w1"], kp["b1"], kp["w2"], kp["b2"], kp["w3"], kp["b3"])

    try:
        out = build(single_buffer_weights=True)
    except Exception:
        # Fallback if this JAX build rejects Buffered(1) on resident operands;
        # identical semantics, just default double-buffering.
        out = build(single_buffer_weights=False)

    return out.reshape(B, 1)


def init_params(key, input_dim, hidden_dim):
    """Deterministic synthetic init, PyTorch nn.Linear layout: w (out, in), b (out,)."""
    k1, k2, k3, k4, k5, k6 = jax.random.split(key, 6)
    s = 0.1
    return {
        "w1": s * jax.random.normal(k1, (hidden_dim, input_dim), jnp.float32),
        "b1": s * jax.random.normal(k2, (hidden_dim,), jnp.float32),
        "w2": s * jax.random.normal(k3, (hidden_dim, hidden_dim), jnp.float32),
        "b2": s * jax.random.normal(k4, (hidden_dim,), jnp.float32),
        "w3": s * jax.random.normal(k5, (1, hidden_dim), jnp.float32),
        "b3": s * jax.random.normal(k6, (1,), jnp.float32),
    }


def reference_forward(x, p):
    """Pure-JAX f32 reference matching the PyTorch module semantics."""
    h1 = jnp.maximum(x @ p["w1"].T + p["b1"], 0.0)
    h2 = jnp.maximum(h1 @ p["w2"].T + p["b2"], 0.0)
    return jax.nn.sigmoid(h2 @ p["w3"].T + p["b3"])


if __name__ == "__main__":
    key = jax.random.PRNGKey(0)
    kx, kx2, kparam = jax.random.split(key, 3)

    batch = 8
    input_dim = 16   # e.g. concatenated (state, action) features
    hidden_dim = 32

    params = init_params(kparam, input_dim, hidden_dim)
    # Hoisted out of the per-call path: pad / bf16-cast the weights once.
    kp, h_pad, in_dim = prepare_params(params)

    # Small batch: single exact tile.
    x = jax.random.normal(kx, (batch, input_dim), jnp.float32)
    out = jax.block_until_ready(gail_discriminator(x, kp, h_pad))
    ref = reference_forward(x, params)
    assert out.shape == (batch, 1), out.shape
    # bf16 MXU inputs with f32 accumulation -> loosened tolerance vs f32 reference.
    assert jnp.allclose(out, ref, atol=2e-2, rtol=2e-2), (out, ref)

    # Larger batch: exercises the multi-tile (>=2 tiles, "parallel" axis) path.
    big_batch = 1024
    x_big = jax.random.normal(kx2, (big_batch, input_dim), jnp.float32)
    out_big = jax.block_until_ready(gail_discriminator(x_big, kp, h_pad))
    ref_big = reference_forward(x_big, params)
    assert out_big.shape == (big_batch, 1), out_big.shape
    assert jnp.allclose(out_big, ref_big, atol=2e-2, rtol=2e-2)

    print("KERNEL_OK")
</pallas_src>

<mosaic_0001>
module attributes {stable_mosaic.version = 11 : i64} {
  func.func @gail_disc_kernel(%arg0: i32, %arg1: memref<8x16xf32, #tpu.memory_space<vmem>>, %arg2: memref<128x16xbf16, #tpu.memory_space<vmem>>, %arg3: memref<128x1xf32, #tpu.memory_space<vmem>>, %arg4: memref<128x128xbf16, #tpu.memory_space<vmem>>, %arg5: memref<128x1xf32, #tpu.memory_space<vmem>>, %arg6: memref<128x1xf32, #tpu.memory_space<vmem>>, %arg7: memref<1x1xf32, #tpu.memory_space<smem>>, %arg8: memref<1x8xf32, #tpu.memory_space<vmem>>) attributes {dimension_semantics = [#tpu.dimension_semantics<parallel>], iteration_bounds = array<i64: 1>, scalar_prefetch = 0 : i64, scratch_operands = 0 : i64, tpu.core_type = #tpu.core_type<tc>, window_params = [{transform_indices = @transform_0, window_bounds = array<i64: 8, 16>}, {pipeline_mode = #tpu.pipeline_mode<synchronous>, transform_indices = @transform_1, window_bounds = array<i64: 128, 16>}, {pipeline_mode = #tpu.pipeline_mode<synchronous>, transform_indices = @transform_2, window_bounds = array<i64: 128, 1>}, {pipeline_mode = #tpu.pipeline_mode<synchronous>, transform_indices = @transform_3, window_bounds = array<i64: 128, 128>}, {pipeline_mode = #tpu.pipeline_mode<synchronous>, transform_indices = @transform_4, window_bounds = array<i64: 128, 1>}, {pipeline_mode = #tpu.pipeline_mode<synchronous>, transform_indices = @transform_5, window_bounds = array<i64: 128, 1>}, {transform_indices = @transform_6, window_bounds = array<i64: 1, 1>}, {transform_indices = @transform_7, window_bounds = array<i64: 1, 8>}]} {
    %c0 = arith.constant 0 : index
    %c0_0 = arith.constant 0 : index
    %0 = vector.load %arg1[%c0, %c0_0] : memref<8x16xf32, #tpu.memory_space<vmem>>, vector<8x16xf32>
    %1 = arith.truncf %0 : vector<8x16xf32> to vector<8x16xbf16>
    %c0_1 = arith.constant 0 : index
    %c0_2 = arith.constant 0 : index
    %2 = vector.load %arg2[%c0_1, %c0_2] : memref<128x16xbf16, #tpu.memory_space<vmem>>, vector<128x16xbf16>
    %cst = arith.constant dense<0.000000e+00> : vector<128x8xf32>
    %3 = tpu.matmul %2, %1, %cst {dimension_numbers = #tpu.dot_dimension_numbers<[1], [1], [0], [0], [0, 0, 1, 0], [], []>} : vector<128x16xbf16>, vector<8x16xbf16>, vector<128x8xf32> -> vector<128x8xf32>
    %c0_3 = arith.constant 0 : index
    %c0_4 = arith.constant 0 : index
    %4 = vector.load %arg3[%c0_3, %c0_4] : memref<128x1xf32, #tpu.memory_space<vmem>>, vector<128x1xf32>
    %5 = vector.broadcast %4 : vector<128x1xf32> to vector<128x8xf32>
    %6 = arith.addf %3, %5 : vector<128x8xf32>
    %cst_5 = arith.constant 0.000000e+00 : f32
    %7 = vector.broadcast %cst_5 : f32 to vector<128x8xf32>
    %8 = arith.maximumf %6, %7 : vector<128x8xf32>
    %9 = arith.truncf %8 : vector<128x8xf32> to vector<128x8xbf16>
    %c0_6 = arith.constant 0 : index
    %c0_7 = arith.constant 0 : index
    %10 = vector.load %arg4[%c0_6, %c0_7] : memref<128x128xbf16, #tpu.memory_space<vmem>>, vector<128x128xbf16>
    %cst_8 = arith.constant dense<0.000000e+00> : vector<128x8xf32>
    %11 = tpu.matmul %10, %9, %cst_8 {dimension_numbers = #tpu.dot_dimension_numbers<[1], [0], [0], [1], [0, 0, 1, 1], [], []>} : vector<128x128xbf16>, vector<128x8xbf16>, vector<128x8xf32> -> vector<128x8xf32>
    %c0_9 = arith.constant 0 : index
    %c0_10 = arith.constant 0 : index
    %12 = vector.load %arg5[%c0_9, %c0_10] : memref<128x1xf32, #tpu.memory_space<vmem>>, vector<128x1xf32>
    %13 = vector.broadcast %12 : vector<128x1xf32> to vector<128x8xf32>
    %14 = arith.addf %11, %13 : vector<128x8xf32>
    %cst_11 = arith.constant 0.000000e+00 : f32
    %15 = vector.broadcast %cst_11 : f32 to vector<128x8xf32>
    %16 = arith.maximumf %14, %15 : vector<128x8xf32>
    %c0_12 = arith.constant 0 : index
    %c0_13 = arith.constant 0 : index
    %17 = vector.load %arg6[%c0_12, %c0_13] : memref<128x1xf32, #tpu.memory_space<vmem>>, vector<128x1xf32>
    %18 = vector.broadcast %17 : vector<128x1xf32> to vector<128x8xf32>
    %19 = arith.mulf %16, %18 : vector<128x8xf32>
    %cst_14 = arith.constant dense<0.000000e+00> : vector<8xf32>
    %20 = vector.multi_reduction <add>, %19, %cst_14 [0] : vector<128x8xf32> to vector<8xf32>
    %21 = vector.shape_cast %20 : vector<8xf32> to vector<1x8xf32>
    %c0_15 = arith.constant 0 : index
    %c0_16 = arith.constant 0 : index
    %22 = memref.load %arg7[%c0_15, %c0_16] : memref<1x1xf32, #tpu.memory_space<smem>>
    %23 = vector.broadcast %22 : f32 to vector<1x8xf32>
    %24 = arith.addf %21, %23 : vector<1x8xf32>
    %25 = arith.negf %24 : vector<1x8xf32>
    %26 = math.exp %25 : vector<1x8xf32>
    %cst_17 = arith.constant 1.000000e+00 : f32
    %27 = vector.broadcast %cst_17 : f32 to vector<1x8xf32>
    %28 = arith.addf %27, %26 : vector<1x8xf32>
    %29 = arith.divf %27, %28 : vector<1x8xf32>
    %c0_18 = arith.constant 0 : index
    %c0_19 = arith.constant 0 : index
    %30 = vector.load %arg8[%c0_18, %c0_19] : memref<1x8xf32, #tpu.memory_space<vmem>>, vector<1x8xf32>
    tpu.vector_store %arg8[%c0_18, %c0_19], %29 {strides = array<i32>} : memref<1x8xf32, #tpu.memory_space<vmem>>, vector<1x8xf32>,
    return
  }
  func.func @transform_0(%arg0: i32) -> (i32, i32) {
    %c0_i32 = arith.constant 0 : i32
    %c0_i32_0 = arith.constant 0 : i32
    return %arg0, %c0_i32 : i32, i32
  }
  func.func @transform_1(%arg0: i32) -> (i32, i32) {
    %c0_i32 = arith.constant 0 : i32
    %c0_i32_0 = arith.constant 0 : i32
    %c0_i32_1 = arith.constant 0 : i32
    return %c0_i32, %c0_i32_0 : i32, i32
  }
  func.func @transform_2(%arg0: i32) -> (i32, i32) {
    %c0_i32 = arith.constant 0 : i32
    %c0_i32_0 = arith.constant 0 : i32
    %c0_i32_1 = arith.constant 0 : i32
    return %c0_i32, %c0_i32_0 : i32, i32
  }
  func.func @transform_3(%arg0: i32) -> (i32, i32) {
    %c0_i32 = arith.constant 0 : i32
    %c0_i32_0 = arith.constant 0 : i32
    %c0_i32_1 = arith.constant 0 : i32
    return %c0_i32, %c0_i32_0 : i32, i32
  }
  func.func @transform_4(%arg0: i32) -> (i32, i32) {
    %c0_i32 = arith.constant 0 : i32
    %c0_i32_0 = arith.constant 0 : i32
    %c0_i32_1 = arith.constant 0 : i32
    return %c0_i32, %c0_i32_0 : i32, i32
  }
  func.func @transform_5(%arg0: i32) -> (i32, i32) {
    %c0_i32 = arith.constant 0 : i32
    %c0_i32_0 = arith.constant 0 : i32
    %c0_i32_1 = arith.constant 0 : i32
    return %c0_i32, %c0_i32_0 : i32, i32
  }
  func.func @transform_6(%arg0: i32) -> (i32, i32) {
    %c0_i32 = arith.constant 0 : i32
    %c0_i32_0 = arith.constant 0 : i32
    %c0_i32_1 = arith.constant 0 : i32
    return %c0_i32, %c0_i32_0 : i32, i32
  }
  func.func @transform_7(%arg0: i32) -> (i32, i32) {
    %c0_i32 = arith.constant 0 : i32
    %c0_i32_0 = arith.constant 0 : i32
    return %c0_i32, %arg0 : i32, i32
  }
}

module attributes {stable_mosaic.version = 11 : i64} {
  func.func @gail_disc_kernel(%arg0: i32, %arg1: memref<8x16xf32, #tpu.memory_space<vmem>>, %arg2: memref<128x16xbf16, #tpu.memory_space<vmem>>, %arg3: memref<128x1xf32, #tpu.memory_space<vmem>>, %arg4: memref<128x128xbf16, #tpu.memory_space<vmem>>, %arg5: memref<128x1xf32, #tpu.memory_space<vmem>>, %arg6: memref<128x1xf32, #tpu.memory_space<vmem>>, %arg7: memref<1x1xf32, #tpu.memory_space<smem>>, %arg8: memref<1x8xf32, #tpu.memory_space<vmem>>) attributes {dimension_semantics = [#tpu.dimension_semantics<parallel>], iteration_bounds = array<i64: 1>, scalar_prefetch = 0 : i64, scratch_operands = 0 : i64, tpu.core_type = #tpu.core_type<tc>, window_params = [{transform_indices = @transform_0, window_bounds = array<i64: 8, 16>}, {pipeline_mode = #tpu.pipeline_mode<synchronous>, transform_indices = @transform_1, window_bounds = array<i64: 128, 16>}, {pipeline_mode = #tpu.pipeline_mode<synchronous>, transform_indices = @transform_2, window_bounds = array<i64: 128, 1>}, {pipeline_mode = #tpu.pipeline_mode<synchronous>, transform_indices = @transform_3, window_bounds = array<i64: 128, 128>}, {pipeline_mode = #tpu.pipeline_mode<synchronous>, transform_indices = @transform_4, window_bounds = array<i64: 128, 1>}, {pipeline_mode = #tpu.pipeline_mode<synchronous>, transform_indices = @transform_5, window_bounds = array<i64: 128, 1>}, {transform_indices = @transform_6, window_bounds = array<i64: 1, 1>}, {transform_indices = @transform_7, window_bounds = array<i64: 1, 8>}]} {
    %c0 = arith.constant 0 : index
    %c0_0 = arith.constant 0 : index
    %0 = vector.load %arg1[%c0, %c0_0] : memref<8x16xf32, #tpu.memory_space<vmem>>, vector<8x16xf32>
    %1 = arith.truncf %0 : vector<8x16xf32> to vector<8x16xbf16>
    %c0_1 = arith.constant 0 : index
    %c0_2 = arith.constant 0 : index
    %2 = vector.load %arg2[%c0_1, %c0_2] : memref<128x16xbf16, #tpu.memory_space<vmem>>, vector<128x16xbf16>
    %cst = arith.constant dense<0.000000e+00> : vector<128x8xf32>
    %3 = tpu.matmul %2, %1, %cst {dimension_numbers = #tpu.dot_dimension_numbers<[1], [1], [0], [0], [0, 0, 1, 0], [], []>} : vector<128x16xbf16>, vector<8x16xbf16>, vector<128x8xf32> -> vector<128x8xf32>
    %c0_3 = arith.constant 0 : index
    %c0_4 = arith.constant 0 : index
    %4 = vector.load %arg3[%c0_3, %c0_4] : memref<128x1xf32, #tpu.memory_space<vmem>>, vector<128x1xf32>
    %5 = vector.broadcast %4 : vector<128x1xf32> to vector<128x8xf32>
    %6 = arith.addf %3, %5 : vector<128x8xf32>
    %cst_5 = arith.constant 0.000000e+00 : f32
    %7 = vector.broadcast %cst_5 : f32 to vector<128x8xf32>
    %8 = arith.maximumf %6, %7 : vector<128x8xf32>
    %9 = arith.truncf %8 : vector<128x8xf32> to vector<128x8xbf16>
    %c0_6 = arith.constant 0 : index
    %c0_7 = arith.constant 0 : index
    %10 = vector.load %arg4[%c0_6, %c0_7] : memref<128x128xbf16, #tpu.memory_space<vmem>>, vector<128x128xbf16>
    %cst_8 = arith.constant dense<0.000000e+00> : vector<128x8xf32>
    %11 = tpu.matmul %10, %9, %cst_8 {dimension_numbers = #tpu.dot_dimension_numbers<[1], [0], [0], [1], [0, 0, 1, 1], [], []>} : vector<128x128xbf16>, vector<128x8xbf16>, vector<128x8xf32> -> vector<128x8xf32>
    %c0_9 = arith.constant 0 : index
    %c0_10 = arith.constant 0 : index
    %12 = vector.load %arg5[%c0_9, %c0_10] : memref<128x1xf32, #tpu.memory_space<vmem>>, vector<128x1xf32>
    %13 = vector.broadcast %12 : vector<128x1xf32> to vector<128x8xf32>
    %14 = arith.addf %11, %13 : vector<128x8xf32>
    %cst_11 = arith.constant 0.000000e+00 : f32
    %15 = vector.broadcast %cst_11 : f32 to vector<128x8xf32>
    %16 = arith.maximumf %14, %15 : vector<128x8xf32>
    %c0_12 = arith.constant 0 : index
    %c0_13 = arith.constant 0 : index
    %17 = vector.load %arg6[%c0_12, %c0_13] : memref<128x1xf32, #tpu.memory_space<vmem>>, vector<128x1xf32>
    %18 = vector.broadcast %17 : vector<128x1xf32> to vector<128x8xf32>
    %19 = arith.mulf %16, %18 : vector<128x8xf32>
    %cst_14 = arith.constant dense<0.000000e+00> : vector<8xf32>
    %20 = vector.multi_reduction <add>, %19, %cst_14 [0] : vector<128x8xf32> to vector<8xf32>
    %21 = vector.shape_cast %20 : vector<8xf32> to vector<1x8xf32>
    %c0_15 = arith.constant 0 : index
    %c0_16 = arith.constant 0 : index
    %22 = memref.load %arg7[%c0_15, %c0_16] : memref<1x1xf32, #tpu.memory_space<smem>>
    %23 = vector.broadcast %22 : f32 to vector<1x8xf32>
    %24 = arith.addf %21, %23 : vector<1x8xf32>
    %25 = arith.negf %24 : vector<1x8xf32>
    %26 = math.exp %25 : vector<1x8xf32>
    %cst_17 = arith.constant 1.000000e+00 : f32
    %27 = vector.broadcast %cst_17 : f32 to vector<1x8xf32>
    %28 = arith.addf %27, %26 : vector<1x8xf32>
    %29 = arith.divf %27, %28 : vector<1x8xf32>
    %c0_18 = arith.constant 0 : index
    %c0_19 = arith.constant 0 : index
    %30 = vector.load %arg8[%c0_18, %c0_19] : memref<1x8xf32, #tpu.memory_space<vmem>>, vector<1x8xf32>
    tpu.vector_store %arg8[%c0_18, %c0_19], %29 {strides = array<i32>} : memref<1x8xf32, #tpu.memory_space<vmem>>, vector<1x8xf32>,
    return
  }
  func.func @transform_0(%arg0: i32) -> (i32, i32) {
    %c0_i32 = arith.constant 0 : i32
    %c0_i32_0 = arith.constant 0 : i32
    return %arg0, %c0_i32 : i32, i32
  }
  func.func @transform_1(%arg0: i32) -> (i32, i32) {
    %c0_i32 = arith.constant 0 : i32
    %c0_i32_0 = arith.constant 0 : i32
    %c0_i32_1 = arith.constant 0 : i32
    return %c0_i32, %c0_i32_0 : i32, i32
  }
  func.func @transform_2(%arg0: i32) -> (i32, i32) {
    %c0_i32 = arith.constant 0 : i32
    %c0_i32_0 = arith.constant 0 : i32
    %c0_i32_1 = arith.constant 0 : i32
    return %c0_i32, %c0_i32_0 : i32, i32
  }
  func.func @transform_3(%arg0: i32) -> (i32, i32) {
    %c0_i32 = arith.constant 0 : i32
    %c0_i32_0 = arith.constant 0 : i32
    %c0_i32_1 = arith.constant 0 : i32
    return %c0_i32, %c0_i32_0 : i32, i32
  }
  func.func @transform_4(%arg0: i32) -> (i32, i32) {
    %c0_i32 = arith.constant 0 : i32
    %c0_i32_0 = arith.constant 0 : i32
    %c0_i32_1 = arith.constant 0 : i32
    return %c0_i32, %c0_i32_0 : i32, i32
  }
  func.func @transform_5(%arg0: i32) -> (i32, i32) {
    %c0_i32 = arith.constant 0 : i32
    %c0_i32_0 = arith.constant 0 : i32
    %c0_i32_1 = arith.constant 0 : i32
    return %c0_i32, %c0_i32_0 : i32, i32
  }
  func.func @transform_6(%arg0: i32) -> (i32, i32) {
    %c0_i32 = arith.constant 0 : i32
    %c0_i32_0 = arith.constant 0 : i32
    %c0_i32_1 = arith.constant 0 : i32
    return %c0_i32, %c0_i32_0 : i32, i32
  }
  func.func @transform_7(%arg0: i32) -> (i32, i32) {
    %c0_i32 = arith.constant 0 : i32
    %c0_i32_0 = arith.constant 0 : i32
    return %c0_i32, %arg0 : i32, i32
  }
}

</mosaic_0001>

<bundles_post_ra>
// kernel: tpu_custom_call.1
= control target key start
LH: loop header
LB: loop body
LE: loop exit
PB: predicated region body
PF: predicated region fallthrough
CT: control target
= control target key end

     0   :  { %vm183_vm0 = vcmask 130048   ;;  %v945_v3 = vmov 0   ;;  %s1229_s0 = inlined_call_operand.vmem [shape: f32[8,16], index: 0, kind: input, shape index: {}]   ;;  %s1230_s1 = inlined_call_operand.vmem [shape: bf16[128,16], index: 1, kind: input, shape index: {}]   ;;  %s1231_s2 = inlined_call_operand.vmem [shape: f32[128,1], index: 2, kind: input, shape index: {}]   ;;  %s1232_s3 = inlined_call_operand.vmem [shape: bf16[128,128], index: 3, kind: input, shape index: {}]   ;;  %s1233_s4 = inlined_call_operand.vmem [shape: f32[128,1], index: 4, kind: input, shape index: {}]   ;;  %s1234_s5 = inlined_call_operand.vmem [shape: f32[128,1], index: 5, kind: input, shape index: {}]   ;;  %s1235_s6 = inlined_call_operand.<no memory space> [shape: f32[1,1], index: 6, kind: input, shape index: {}]   ;;  %s1236_s7 = inlined_call_operand.hbm [shape: f32[1,8], index: 7, kind: output, shape index: {}]  }
   0x1   :  { %v47_v0 = vld [vmem:[%s1231_s2] sm:$0xff]  ;;  %v49_v2 = vld [vmem:[%s1231_s2 + $0x10] sm:$0xff]  ;;  %899 = vset.pattern.permute.xlu0 %v945_v3  ;;  %900 = vset.pattern.permute.xlu1 %v945_v3  ;;  %v48_v5 = vld [vmem:[%s1231_s2 + $0x8] sm:$0xff] }
   0x2   :  { %v29_v1 = vld [vmem:[%s1229_s0] sm:$0xff]  ;;  %65 = vperm.xlu0 %899, %v47_v0   ;;  %75 = vperm.xlu1 %900, %v49_v2   ;;  %v50_v8 = vld [vmem:[%s1231_s2 + $0x18] sm:$0xff]  ;;  %v902_v10 = vld [vmem:[%s1230_s1 + $0x8] sm:$0xff]  }
   0x3   :  { %v30_v4 = vpack.c.bf16 %v29_v1, %v29_v1  ;;  %v901_v6 = vld [vmem:[%s1230_s1] sm:$0xff]   ;;  %v52_v11 = vld [vmem:[%s1231_s2 + $0x28] sm:$0xff]  ;;  %v903_v12 = vld [vmem:[%s1230_s1 + $0x10] sm:$0xff]  }
   0x4   :  { %832 = vmatprep.mubr.msk.bf16.mxu0 %vm183_vm0, %v901_v6  ;;  %v51_v9 = vld [vmem:[%s1231_s2 + $0x20] sm:$0xff]  ;;  %v53_v13 = vld [vmem:[%s1231_s2 + $0x30] sm:$0xff]  ;;  %v54_v14 = vld [vmem:[%s1231_s2 + $0x38] sm:$0xff] }
   0x5   :  { %896 = vmatprep.subr.msk.bf16.mxu0 %vm183_vm0, %v30_v4  ;;  %v209_v7 = vsel %vm183_vm0, %v30_v4, 0  ;;  %v55_v15 = vld [vmem:[%s1231_s2 + $0x40] sm:$0xff]  ;;  %v904_v16 = vld [vmem:[%s1230_s1 + $0x18] sm:$0xff]   ;;  %v56_v17 = vld [vmem:[%s1231_s2 + $0x48] sm:$0xff] }
   0x6   :  { %831 = vmatpush3.bf16.xpose.msra.mxu0 %v209_v7  ;;  %70 = vperm.xlu0 %899, %v48_v5   ;;  %v905_v18 = vld [vmem:[%s1230_s1 + $0x20] sm:$0xff]   ;;  %v57_v19 = vld [vmem:[%s1231_s2 + $0x50] sm:$0xff]  ;;  %v58_v20 = vld [vmem:[%s1231_s2 + $0x58] sm:$0xff] }
   0x7   :  { %80 = vperm.xlu1 %900, %v50_v8   ;;  %v59_v21 = vld [vmem:[%s1231_s2 + $0x60] sm:$0xff]  ;;  %v906_v22 = vld [vmem:[%s1230_s1 + $0x28] sm:$0xff]   ;;  %v907_v24 = vld [vmem:[%s1230_s1 + $0x30] sm:$0xff]  }
   0x8   :  { %v60_v23 = vld [vmem:[%s1231_s2 + $0x68] sm:$0xff]  ;;  %v61_v25 = vld [vmem:[%s1231_s2 + $0x70] sm:$0xff]  ;;  %v62_v26 = vld [vmem:[%s1231_s2 + $0x78] sm:$0xff] }
   0xa   :  { %85 = vperm.xlu0 %899, %v51_v9  }
   0xb   :  { %90 = vperm.xlu1 %900, %v52_v11  }
   0xd   :  { %833 = vmatmul.mubr.msk.bf16.vlgmr.msra.gmra.mrb[0].mxu0 %vm183_vm0, %v902_v10 }
   0xe   :  { %836 = vmatprep.mubr.msk.bf16.mxu0 %vm183_vm0, %v903_v12  ;;  %95 = vperm.xlu0 %899, %v53_v13  }
   0xf   :  { %100 = vperm.xlu1 %900, %v54_v14  }
  0x12   :  { %105 = vperm.xlu0 %899, %v55_v15  }
  0x13   :  { %110 = vperm.xlu1 %900, %v56_v17  }
  0x15   :  { %837 = vmatmul.mubr.msk.bf16.gmra.mrb[4].mxu0 %vm183_vm0, %v904_v16 }
  0x16   :  { %840 = vmatprep.mubr.msk.bf16.mxu0 %vm183_vm0, %v905_v18  ;;  %115 = vperm.xlu0 %899, %v57_v19  }
  0x17   :  { %120 = vperm.xlu1 %900, %v58_v20  }
  0x1a   :  { %125 = vperm.xlu0 %899, %v59_v21  }
  0x1b   :  { %130 = vperm.xlu1 %900, %v60_v23  }
  0x1d   :  { %841 = vmatmul.mubr.msk.bf16.gmra.mrb[8].mxu0 %vm183_vm0, %v906_v22 }
  0x1e   :  { %844 = vmatprep.mubr.msk.bf16.mxu0 %vm183_vm0, %v907_v24 }
  0x1f   :  { %13 = vsyncpa [#allocation4], 0  ;;  %135 = vperm.xlu0 %899, %v61_v25   ;;  %140 = vperm.xlu1 %900, %v62_v26   ;;  %v348_v27 = vld [vmem:[%s1233_s4] sm:$0xff]  ;;  %v908_v28 = vld [vmem:[%s1230_s1 + $0x38] sm:$0xff]   ;;  %vm717_vm1 = vcmask 64512   ;;  %s946_s27 = smov [#allocation3]  }
  0x20   :  { %v349_v29 = vld [vmem:[%s1233_s4 + $0x8] sm:$0xff]  ;;  %v350_v30 = vld [vmem:[%s1233_s4 + $0x10] sm:$0xff]  ;;  %v351_v31 = vld [vmem:[%s1233_s4 + $0x18] sm:$0xff]  ;;  %s772_s28 = sshll.u32 %s946_s27, 4  ;;  %vm764_vm2 = vcmask 57344   ;;  %s773_s28 = int_to_ptr.vmem [resolvable:$true] %s772_s28 }
  0x21   :  { %v605_v32 = vld [vmem:[%s1234_s5] sm:$0xff]  ;;  %v606_v33 = vld [vmem:[%s1234_s5 + $0x8] sm:$0xff]  ;;  %v607_v35 = vld [vmem:[%s1234_s5 + $0x10] sm:$0xff]  ;;  %s921_s29 = scalar_lea.vmem %s773_s28, 16  ;;  %s925_s2 = scalar_lea.vmem %s773_s28, 32 }
  0x22   :  { %v352_v34 = vld [vmem:[%s1233_s4 + $0x20] sm:$0xff]  ;;  %v353_v36 = vld [vmem:[%s1233_s4 + $0x28] sm:$0xff]  ;;  %v608_v37 = vld [vmem:[%s1234_s5 + $0x18] sm:$0xff]  ;;  %p922_p0 = scmp.ne.s32.totalorder %s773_s28, %s921_s29  ;;  %p926_p1 = scmp.lt.s32.totalorder %s773_s28, %s773_s28 }
  0x23   :  { %366 = vperm.xlu0 %899, %v348_v27   ;;  %371 = vperm.xlu1 %900, %v349_v29   ;;  %v354_v38 = vld [vmem:[%s1233_s4 + $0x30] sm:$0xff]  ;;  %v609_v39 = vld [vmem:[%s1234_s5 + $0x20] sm:$0xff]  ;;  %v355_v40 = vld [vmem:[%s1233_s4 + $0x38] sm:$0xff]  ;;  %p927_p2 = scmp.lt.s32.totalorder %s925_s2, %s921_s29 }
  0x24   :  { %v610_v41 = vld [vmem:[%s1234_s5 + $0x28] sm:$0xff]  ;;  %v356_v42 = vld [vmem:[%s1233_s4 + $0x40] sm:$0xff]  ;;  %v611_v43 = vld [vmem:[%s1234_s5 + $0x30] sm:$0xff] }
  0x25   :  { %845 = vmatmul.mubr.msk.bf16.gmra.mrb[12].mxu0 %vm183_vm0, %v908_v28  ;;  %v357_v44 = vld [vmem:[%s1233_s4 + $0x48] sm:$0xff]  ;;  %v612_v45 = vld [vmem:[%s1234_s5 + $0x38] sm:$0xff]  ;;  %v358_v46 = vld [vmem:[%s1233_s4 + $0x50] sm:$0xff]  ;;  %p928_p3 = por %p927_p2, %p926_p1 }
  0x26   :  { %v613_v47 = vld [vmem:[%s1234_s5 + $0x40] sm:$0xff]  ;;  %v359_v48 = vld [vmem:[%s1233_s4 + $0x58] sm:$0xff]  ;;  %v614_v49 = vld [vmem:[%s1234_s5 + $0x48] sm:$0xff] }
  0x27   :  { %376 = vperm.xlu0 %899, %v350_v30   ;;  %381 = vperm.xlu1 %900, %v351_v31   ;;  %v360_v50 = vld [vmem:[%s1233_s4 + $0x60] sm:$0xff]  ;;  %v615_v51 = vld [vmem:[%s1234_s5 + $0x50] sm:$0xff]  ;;  %v361_v52 = vld [vmem:[%s1233_s4 + $0x68] sm:$0xff]  ;;  %p929_p4 = pnand %p928_p3, %p922_p0 }
  0x28   :  { %v616_v53 = vld [vmem:[%s1234_s5 + $0x58] sm:$0xff]  ;;  %v362_v54 = vld [vmem:[%s1233_s4 + $0x70] sm:$0xff]  ;;  %v617_v55 = vld [vmem:[%s1234_s5 + $0x60] sm:$0xff] }
  0x29   :  { %v363_v56 = vld [vmem:[%s1233_s4 + $0x78] sm:$0xff]  ;;  %v618_v57 = vld [vmem:[%s1234_s5 + $0x68] sm:$0xff]  ;;  %v619_v58 = vld [vmem:[%s1234_s5 + $0x70] sm:$0xff] }
  0x2a   :  { %v620_v59 = vld [vmem:[%s1234_s5 + $0x78] sm:$0xff]  ;;  %v909_v60 = vld [vmem:[%s1232_s3] sm:$0xff]   ;;  %v910_v61 = vld [vmem:[%s1232_s3 + $0x10] sm:$0xff]  }
  0x2b   :  { %623 = vperm.xlu0 %899, %v605_v32   ;;  %628 = vperm.xlu1 %900, %v606_v33  }
  0x2c   :  { %864 = vmatprep.mubr.bf16.mxu0 %v909_v60  ;;  %868 = vmatprep.mubr.bf16.mxu1 %v910_v61 }
  0x2f   :  { %386 = vperm.xlu0 %899, %v352_v34   ;;  %633 = vperm.xlu1 %900, %v607_v35  }
  0x33   :  { %391 = vperm.xlu0 %899, %v353_v36   ;;  %638 = vperm.xlu1 %900, %v608_v37  }
  0x37   :  { %396 = vperm.xlu0 %899, %v354_v38   ;;  %643 = vperm.xlu1 %900, %v609_v39  }
  0x3b   :  { %401 = vperm.xlu0 %899, %v355_v40   ;;  %648 = vperm.xlu1 %900, %v610_v41  }
  0x3f   :  { %406 = vperm.xlu0 %899, %v356_v42   ;;  %653 = vperm.xlu1 %900, %v611_v43  }
  0x43   :  { %411 = vperm.xlu0 %899, %v357_v44   ;;  %658 = vperm.xlu1 %900, %v612_v45  }
  0x47   :  { %416 = vperm.xlu0 %899, %v358_v46   ;;  %663 = vperm.xlu1 %900, %v613_v47  }
  0x4b   :  { %421 = vperm.xlu0 %899, %v359_v48   ;;  %668 = vperm.xlu1 %900, %v614_v49  }
  0x4f   :  { %426 = vperm.xlu0 %899, %v360_v50   ;;  %673 = vperm.xlu1 %900, %v615_v51  }
  0x53   :  { %431 = vperm.xlu0 %899, %v361_v52   ;;  %678 = vperm.xlu1 %900, %v616_v53  }
  0x57   :  { %436 = vperm.xlu0 %899, %v362_v54   ;;  %683 = vperm.xlu1 %900, %v617_v55  }
  0x5b   :  { %441 = vperm.xlu0 %899, %v363_v56   ;;  %688 = vperm.xlu1 %900, %v618_v57  }
  0x5f   :  { %693 = vperm.xlu0 %899, %v619_v58   ;;  %698 = vperm.xlu1 %900, %v620_v59  }
  0x81   :  { %v66_v62 = vpop.permute.xlu0 %65  ;;  %v76_v63 = vpop.permute.xlu1 %75 }
  0x85   :  { %v71_v0 = vpop.permute.xlu0 %70 }
  0x86   :  { %v81_v1 = vpop.permute.xlu1 %80 }
  0x89   :  { %v86_v2 = vpop.permute.xlu0 %85 }
  0x8a   :  { %v91_v3 = vpop.permute.xlu1 %90 }
  0x8d   :  { %v96_v4 = vpop.permute.xlu0 %95 }
  0x8e   :  { %v101_v8 = vpop.permute.xlu1 %100 }
  0x91   :  { %v106_v16 = vpop.permute.xlu0 %105 }
  0x92   :  { %v111_v20 = vpop.permute.xlu1 %110 }
  0x95   :  { %v116_v29 = vpop.permute.xlu0 %115 }
  0x96   :  { %v121_v33 = vpop.permute.xlu1 %120 }
  0x99   :  { %v126_v41 = vpop.permute.xlu0 %125 }
  0x9a   :  { %v131_v46 = vpop.permute.xlu1 %130 }
  0x9e   :  { %v136_v53 = vpop.permute.xlu0 %135  ;;  %v141_v58 = vpop.permute.xlu1 %140 }
  0xe0   :  { %v834_v5 = vpop.f32.mrb[0].mxu0 }
  0xe1   :  { %v254_v6 = vadd.f32 %v834_v5, %v76_v63  ;;  %v245_v7 = vpop.f32.mrb[1].mxu0 }
  0xe2   :  { %v246_v9 = vadd.f32 %v245_v7, %v66_v62  ;;  %v835_v10 = vpop.f32.mrb[2].mxu0  ;;  %v912_v7 = vld [vmem:[%s1232_s3 + $0x18] sm:$0xff]  }
  0xe3   :  { %v257_v11 = vadd.f32 %v835_v10, %v81_v1  ;;  %v248_v12 = vpop.f32.mrb[3].mxu0  ;;  %v310_v14 = vmax.f32 %v254_v6, 0.0  ;;  %v911_v6 = vld [vmem:[%s1232_s3 + $0x8] sm:$0xff]   ;;  %v915_v10 = vld [vmem:[%s1232_s3 + $0x30] sm:$0xff]  }
  0xe4   :  { %v249_v13 = vadd.f32 %v248_v12, %v71_v0  ;;  %v308_v17 = vmax.f32 %v246_v9, 0.0  ;;  %v914_v9 = vld [vmem:[%s1232_s3 + $0x28] sm:$0xff]   ;;  %v367_v12 = vpop.permute.xlu0 %366 }
  0xe5   :  { %v311_v15 = vmax.f32 %v257_v11, 0.0  ;;  %v916_v11 = vld [vmem:[%s1232_s3 + $0x38] sm:$0xff]  }
  0xe6   :  { %v309_v18 = vmax.f32 %v249_v13, 0.0  ;;  %v372_v13 = vpop.permute.xlu1 %371 }
  0xe7   :  { %v325_v19 = vpack.c.bf16 %v311_v15, %v310_v14 }
  0xe8   :  { %v324_v21 = vpack.c.bf16 %v309_v18, %v308_v17  ;;  %v838_v22 = vpop.f32.mrb[4].mxu0  ;;  %v377_v14 = vpop.permute.xlu0 %376 }
  0xe9   :  { %v270_v23 = vadd.f32 %v838_v22, %v96_v4  ;;  %v261_v24 = vpop.f32.mrb[5].mxu0 }
  0xea   :  { %v262_v25 = vadd.f32 %v261_v24, %v86_v2  ;;  %v839_v26 = vpop.f32.mrb[6].mxu0  ;;  %848 = vmatprep.subr.bf16.mxu0 %v324_v21  ;;  %880 = vmatprep.subr.bf16.mxu1 %v324_v21  ;;  %v382_v15 = vpop.permute.xlu1 %381 }
  0xeb   :  { %v273_v27 = vadd.f32 %v839_v26, %v101_v8  ;;  %v264_v28 = vpop.f32.mrb[7].mxu0  ;;  %849 = vmatpush3.bf16.msra.mxu0 %v324_v21  ;;  %888 = vmatpush3.bf16.msra.mxu1 %v324_v21  ;;  %v314_v31 = vmax.f32 %v270_v23, 0.0  ;;  %v913_v8 = vld [vmem:[%s1232_s3 + $0x20] sm:$0xff]  }
  0xec   :  { %v265_v30 = vadd.f32 %v264_v28, %v91_v3  ;;  %850 = vmatprep.subr.bf16.mxu0 %v325_v19  ;;  %881 = vmatprep.subr.bf16.mxu1 %v325_v19  ;;  %v312_v34 = vmax.f32 %v262_v25, 0.0 }
  0xed   :  { %v315_v32 = vmax.f32 %v273_v27, 0.0 }
  0xee   :  { %v313_v35 = vmax.f32 %v265_v30, 0.0  ;;  %v629_v17 = vpop.permute.xlu1 %628 }
  0xef   :  { %v327_v36 = vpack.c.bf16 %v315_v32, %v314_v31  ;;  %851 = vmatpush3.bf16.msra.mxu0 %v325_v19  ;;  %889 = vmatpush3.bf16.msra.mxu1 %v325_v19 }
  0xf0   :  { %v326_v37 = vpack.c.bf16 %v313_v35, %v312_v34  ;;  %v842_v38 = vpop.f32.mrb[8].mxu0 }
  0xf1   :  { %v286_v39 = vadd.f32 %v842_v38, %v116_v29  ;;  %v277_v40 = vpop.f32.mrb[9].mxu0 }
  0xf2   :  { %v278_v42 = vadd.f32 %v277_v40, %v106_v16  ;;  %v843_v43 = vpop.f32.mrb[10].mxu0  ;;  %852 = vmatprep.subr.bf16.mxu0 %v326_v37  ;;  %882 = vmatprep.subr.bf16.mxu1 %v326_v37  ;;  %v624_v16 = vpop.permute.xlu0 %623 }
  0xf3   :  { %v289_v44 = vadd.f32 %v843_v43, %v121_v33  ;;  %v280_v45 = vpop.f32.mrb[11].mxu0  ;;  %853 = vmatpush3.bf16.msra.mxu0 %v326_v37  ;;  %890 = vmatpush3.bf16.msra.mxu1 %v326_v37  ;;  %v318_v48 = vmax.f32 %v286_v39, 0.0  ;;  %v634_v19 = vpop.permute.xlu1 %633 }
  0xf4   :  { %v281_v47 = vadd.f32 %v280_v45, %v111_v20  ;;  %854 = vmatprep.subr.bf16.mxu0 %v327_v36  ;;  %883 = vmatprep.subr.bf16.mxu1 %v327_v36  ;;  %v316_v50 = vmax.f32 %v278_v42, 0.0 }
  0xf5   :  { %v319_v49 = vmax.f32 %v289_v44, 0.0 }
  0xf6   :  { %v317_v51 = vmax.f32 %v281_v47, 0.0  ;;  %v387_v18 = vpop.permute.xlu0 %386 }
  0xf7   :  { %v329_v52 = vpack.c.bf16 %v319_v49, %v318_v48  ;;  %855 = vmatpush3.bf16.msra.mxu0 %v327_v36  ;;  %891 = vmatpush3.bf16.msra.mxu1 %v327_v36  ;;  %v639_v21 = vpop.permute.xlu1 %638 }
  0xf8   :  { %v328_v54 = vpack.c.bf16 %v317_v51, %v316_v50  ;;  %v846_v55 = vpop.f32.mrb[12].mxu0 }
  0xf9   :  { %v302_v56 = vadd.f32 %v846_v55, %v136_v53  ;;  %v293_v57 = vpop.f32.mrb[13].mxu0 }
  0xfa   :  { %v294_v59 = vadd.f32 %v293_v57, %v126_v41  ;;  %v847_v60 = vpop.f32.mrb[14].mxu0  ;;  %856 = vmatprep.subr.bf16.mxu0 %v328_v54  ;;  %884 = vmatprep.subr.bf16.mxu1 %v328_v54  ;;  %v392_v20 = vpop.permute.xlu0 %391 }
  0xfb   :  { %v305_v61 = vadd.f32 %v847_v60, %v141_v58  ;;  %v296_v62 = vpop.f32.mrb[15].mxu0  ;;  %857 = vmatpush3.bf16.msra.mxu0 %v328_v54  ;;  %892 = vmatpush3.bf16.msra.mxu1 %v328_v54  ;;  %v322_v0 = vmax.f32 %v302_v56, 0.0  ;;  %v644_v23 = vpop.permute.xlu1 %643 }
  0xfc   :  { %v297_v63 = vadd.f32 %v296_v62, %v131_v46  ;;  %858 = vmatprep.subr.bf16.mxu0 %v329_v52  ;;  %885 = vmatprep.subr.bf16.mxu1 %v329_v52  ;;  %v320_v2 = vmax.f32 %v294_v59, 0.0 }
  0xfd   :  { %v323_v1 = vmax.f32 %v305_v61, 0.0 }
  0xfe   :  { %v321_v3 = vmax.f32 %v297_v63, 0.0  ;;  %v397_v22 = vpop.permute.xlu0 %396 }
  0xff   :  { %v331_v4 = vpack.c.bf16 %v323_v1, %v322_v0  ;;  %859 = vmatpush3.bf16.msra.mxu0 %v329_v52  ;;  %893 = vmatpush3.bf16.msra.mxu1 %v329_v52  ;;  %v649_v25 = vpop.permute.xlu1 %648 }
 0x100   :  { %v330_v5 = vpack.c.bf16 %v321_v3, %v320_v2 }
 0x102   :  { %860 = vmatprep.subr.bf16.mxu0 %v330_v5  ;;  %886 = vmatprep.subr.bf16.mxu1 %v330_v5  ;;  %v402_v24 = vpop.permute.xlu0 %401 }
 0x103   :  { %861 = vmatpush3.bf16.msra.mxu0 %v330_v5  ;;  %894 = vmatpush3.bf16.msra.mxu1 %v330_v5  ;;  %v654_v27 = vpop.permute.xlu1 %653 }
 0x104   :  { %862 = vmatprep.subr.bf16.mxu0 %v331_v4  ;;  %887 = vmatprep.subr.bf16.mxu1 %v331_v4 }
 0x106   :  { %v407_v26 = vpop.permute.xlu0 %406 }
 0x107   :  { %863 = vmatpush3.bf16.msra.mxu0 %v331_v4  ;;  %895 = vmatpush3.bf16.msra.mxu1 %v331_v4  ;;  %v659_v29 = vpop.permute.xlu1 %658 }
 0x10a   :  { %865 = vmatmul.mubr.bf16.vlgmr.msra.gmra.mrb[16].mxu0 %v911_v6  ;;  %869 = vmatmul.mubr.bf16.vlgmr.msra.gmra.mrb[0].mxu1 %v912_v7  ;;  %v412_v28 = vpop.permute.xlu0 %411 }
 0x10b   :  { %872 = vmatprep.mubr.bf16.mxu1 %v913_v8  ;;  %v1192_v31 = vpop.permute.xlu1 %663 }
 0x10e   :  { %v417_v30 = vpop.permute.xlu0 %416 }
 0x10f   :  { %v1194_v33 = vpop.permute.xlu1 %668 }
 0x112   :  { %873 = vmatmul.mubr.bf16.gmra.mrb[4].mxu1 %v914_v9  ;;  %v422_v32 = vpop.permute.xlu0 %421 }
 0x113   :  { %876 = vmatprep.mubr.bf16.mxu1 %v915_v10  ;;  %v674_v59 = vpop.permute.xlu1 %673 }
 0x116   :  { %v427_v53 = vpop.permute.xlu0 %426 }
 0x11a   :  { %877 = vmatmul.mubr.bf16.gmra.mrb[8].mxu1 %v916_v11  ;;  %v432_v9 = vpop.permute.xlu0 %431 }
 0x1dd   :  { %v866_v34 = vpop.f32.mrb[16].mxu0  ;;  %v870_v35 = vpop.f32.mrb[0].mxu1 }
 0x1de   :  { %v535_v36 = vadd.f32 %v866_v34, %v377_v14  ;;  %v526_v37 = vpop.f32.mrb[17].mxu0  ;;  %v542_v38 = vpop.f32.mrb[1].mxu1  ;;  %v551_v55 = vadd.f32 %v870_v35, %v397_v22 }
 0x1df   :  { %v527_v39 = vadd.f32 %v526_v37, %v367_v12  ;;  %v867_v40 = vpop.f32.mrb[18].mxu0  ;;  %v871_v41 = vpop.f32.mrb[2].mxu1  ;;  %v543_v47 = vadd.f32 %v542_v38, %v387_v18 }
 0x1e0   :  { %v538_v42 = vadd.f32 %v867_v40, %v382_v15  ;;  %v529_v43 = vpop.f32.mrb[19].mxu0  ;;  %v545_v44 = vpop.f32.mrb[3].mxu1  ;;  %v591_v45 = vmax.f32 %v535_v36, 0.0  ;;  %v554_v60 = vadd.f32 %v871_v41, %v402_v24  ;;  %v595_v6 = vmax.f32 %v551_v55, 0.0 }
 0x1e1   :  { %v589_v46 = vmax.f32 %v527_v39, 0.0  ;;  %v530_v48 = vadd.f32 %v529_v43, %v372_v13  ;;  %v546_v52 = vadd.f32 %v545_v44, %v392_v20  ;;  %v593_v56 = vmax.f32 %v543_v47, 0.0  ;;  %v679_v15 = vpop.permute.xlu1 %678  ;;  %v437_v37 = vpop.permute.xlu0 %436 }
 0x1e2   :  { %v592_v50 = vmax.f32 %v538_v42, 0.0  ;;  %v703_v54 = vmul.f32 %v634_v19, %v591_v45  ;;  %v596_v12 = vmax.f32 %v554_v60, 0.0 }
 0x1e3   :  { %v701_v49 = vmul.f32 %v624_v16, %v589_v46  ;;  %v590_v51 = vmax.f32 %v530_v48, 0.0  ;;  %v594_v1 = vmax.f32 %v546_v52, 0.0  ;;  %v705_v7 = vmul.f32 %v644_v23, %v593_v56 }
 0x1e4   :  { %v704_v63 = vmul.f32 %v639_v21, %v592_v50  ;;  %v721_v5 = vsel %vm717_vm1, %v703_v54, 0.0  ;;  %v708_v34 = vmul.f32 %v659_v29, %v596_v12 }
 0x1e5   :  { %v702_v57 = vmul.f32 %v629_v17, %v590_v51  ;;  %v874_v58 = vpop.f32.mrb[4].mxu1  ;;  %v718_v62 = vsel %vm717_vm1, %v701_v49, 0.0  ;;  %v706_v13 = vmul.f32 %v649_v25, %v594_v1  ;;  %v707_v17 = vmul.f32 %v654_v27, %v595_v6  ;;  %v442_v49 = vpop.permute.xlu0 %441 }
 0x1e6   :  { %v558_v61 = vpop.f32.mrb[5].mxu1  ;;  %v723_v11 = vsel %vm717_vm1, %v704_v63, 0.0  ;;  %v725_v18 = vsel %vm717_vm1, %v705_v7, 0.0  ;;  %v567_v19 = vadd.f32 %v874_v58, %v417_v30  ;;  %v684_v30 = vpop.permute.xlu1 %683  ;;  %v731_v42 = vsel %vm717_vm1, %v708_v34, 0.0 }
 0x1e7   :  { %v719_v0 = vsel %vm717_vm1, %v702_v57, 0.0  ;;  %v875_v2 = vpop.f32.mrb[6].mxu1  ;;  %v559_v8 = vadd.f32 %v558_v61, %v407_v26  ;;  %v727_v23 = vsel %vm717_vm1, %v706_v13, 0.0 }
 0x1e8   :  { %v720_v3 = vadd.f32 %v719_v0, %v718_v62  ;;  %v561_v4 = vpop.f32.mrb[7].mxu1  ;;  %v570_v26 = vadd.f32 %v875_v2, %v422_v32  ;;  %v599_v39 = vmax.f32 %v567_v19, 0.0 }
 0x1e9   :  { %v562_v14 = vadd.f32 %v561_v4, %v412_v28  ;;  %v597_v20 = vmax.f32 %v559_v8, 0.0  ;;  %v729_v28 = vsel %vm717_vm1, %v707_v17, 0.0  ;;  %v694_v62 = vpop.permute.xlu0 %693 }
 0x1ea   :  { %v722_v10 = vadd.f32 %v721_v5, %v720_v3  ;;  %v600_v43 = vmax.f32 %v570_v26, 0.0  ;;  %v711_v45 = vmul.f32 %v674_v59, %v599_v39  ;;  %v689_v54 = vpop.permute.xlu1 %688 }
 0x1eb   :  { %v598_v35 = vmax.f32 %v562_v14, 0.0  ;;  %v709_v27 = vmul.f32 %v1192_v31, %v597_v20 }
 0x1ec   :  { %v724_v16 = vadd.f32 %v723_v11, %v722_v10  ;;  %v712_v51 = vmul.f32 %v679_v15, %v600_v43  ;;  %v737_v56 = vsel %vm717_vm1, %v711_v45, 0.0 }
 0x1ed   :  { %v878_v21 = vpop.f32.mrb[8].mxu1  ;;  %v710_v29 = vmul.f32 %v1194_v33, %v598_v35  ;;  %v733_v46 = vsel %vm717_vm1, %v709_v27, 0.0 }
 0x1ee   :  { %v726_v22 = vadd.f32 %v725_v18, %v724_v16  ;;  %v574_v24 = vpop.f32.mrb[9].mxu1  ;;  %v583_v47 = vadd.f32 %v878_v21, %v437_v37  ;;  %v739_v59 = vsel %vm717_vm1, %v712_v51, 0.0  ;;  %v699_v2 = vpop.permute.xlu1 %698  ;;  %v756_v16 = vstv %s1235_s6 }
 0x1ef   :  { %v879_v36 = vpop.f32.mrb[10].mxu1  ;;  %v575_v40 = vadd.f32 %v574_v24, %v427_v53  ;;  %v735_v31 = vsel %vm717_vm1, %v710_v29, 0.0 }
 0x1f0   :  { %v728_v38 = vadd.f32 %v727_v23, %v726_v22  ;;  %v577_v25 = vpop.f32.mrb[11].mxu1  ;;  %v586_v52 = vadd.f32 %v879_v36, %v442_v49  ;;  %v603_v57 = vmax.f32 %v583_v47, 0.0 }
 0x1f1   :  { %v578_v44 = vadd.f32 %v577_v25, %v432_v9  ;;  %v601_v48 = vmax.f32 %v575_v40, 0.0 }
 0x1f2   :  { %v730_v41 = vadd.f32 %v729_v28, %v728_v38  ;;  %v604_v60 = vmax.f32 %v586_v52, 0.0  ;;  %v715_v0 = vmul.f32 %v694_v62, %v603_v57 }
 0x1f3   :  { %v602_v53 = vmax.f32 %v578_v44, 0.0  ;;  %v713_v33 = vmul.f32 %v684_v30, %v601_v48 }
 0x1f4   :  { %v732_v32 = vadd.f32 %v731_v42, %v730_v41  ;;  %v716_v4 = vmul.f32 %v699_v2, %v604_v60  ;;  %v745_v7 = vsel %vm717_vm1, %v715_v0, 0.0 }
 0x1f5   :  { %v714_v61 = vmul.f32 %v689_v54, %v602_v53  ;;  %v741_v1 = vsel %vm717_vm1, %v713_v33, 0.0 }
 0x1f6   :  { %v734_v50 = vadd.f32 %v733_v46, %v732_v32  ;;  %v747_v9 = vsel %vm717_vm1, %v716_v4, 0.0 }
 0x1f7   :  { %v743_v5 = vsel %vm717_vm1, %v714_v61, 0.0 }
 0x1f8   :  { %v736_v55 = vadd.f32 %v735_v31, %v734_v50 }
 0x1fa   :  { %v738_v58 = vadd.f32 %v737_v56, %v736_v55 }
 0x1fc   :  { %v740_v63 = vadd.f32 %v739_v59, %v738_v58 }
 0x1fe   :  { %v742_v3 = vadd.f32 %v741_v1, %v740_v63 }
 0x200   :  { %v744_v6 = vadd.f32 %v743_v5, %v742_v3 }
 0x202   :  { %v746_v8 = vadd.f32 %v745_v7, %v744_v6 }
 0x204   :  { %v748_v10 = vadd.f32 %v747_v9, %v746_v8 }
 0x206   :  { %v749_v11 = vrot.slane %v748_v10, 4 }
 0x208   :  { %v750_v12 = vadd.f32 %v749_v11, %v748_v10 }
 0x20a   :  { %v751_v13 = vrot.slane %v750_v12, 2 }
 0x20c   :  { %v752_v14 = vadd.f32 %v751_v13, %v750_v12 }
 0x20e   :  { %v753_v15 = vrot.slane %v752_v14, 1 }
 0x210   :  { %v754_v17 = vadd.f32 %v753_v15, %v752_v14 }
 0x212   :  { %v757_v18 = vadd.f32 %v756_v16, %v754_v17 }
 0x214   :  { %v804_v19 = vmul.f32 -1.442695, %v757_v18 }
 0x216   :  { %917 = vpow2.f32 %v804_v19 }
 0x220   :  { %v918_v20 = vpop.eup %917 }
 0x221   :  { %v761_v21 = vadd.f32 1.0, %v918_v20 }
 0x223   :  { %919 = vrcp.f32 %v761_v21 }
 0x22d   :  { %v920_v22 = vpop.eup %919 }
 0x22e   :  { %765 = vst.msk [vmem:[#allocation3] sm:$0x1] %vm764_vm2, %v920_v22 }
 0x22f   :  { %932 = shalt.err (!%p929_p4)
}
 0x230   :  { %s933_s8 = scalar_lea.hbm %s1236_s7, 16 }
 0x231   :  { %p934_p5 = scmp.ne.s32.totalorder %s1236_s7, %s933_s8  ;;  %p937_p6 = scmp.lt.u32.totalorder %s933_s8, %s1236_s7 }
 0x233   :  { %p939_p7 = pnand %p937_p6, %p934_p5 }
 0x235   :  { %942 = shalt.err (!%p939_p7)
}
 0x236   :  { %775 = dma.vmem_to_hbm [thread:$0]  %s773_s28, 16, %s1236_s7, [#allocation4]  }
 0x237   :  { %943 = dma.done.wait [#allocation4], 16  }
 0x238   :  { %944 = vsyncadd [#allocation4], 4294967280 }
 0x239   :  { %779 = vsyncpa [#allocation4], 1 }

// kernel: tpu_custom_call.1
= control target key start
LH: loop header
LB: loop body
LE: loop exit
PB: predicated region body
PF: predicated region fallthrough
CT: control target
= control target key end

     0   :  { %vm183_vm0 = vcmask 130048   ;;  %v945_v3 = vmov 0   ;;  %s1229_s0 = inlined_call_operand.vmem [shape: f32[8,16], index: 0, kind: input, shape index: {}]   ;;  %s1230_s1 = inlined_call_operand.vmem [shape: bf16[128,16], index: 1, kind: input, shape index: {}]   ;;  %s1231_s2 = inlined_call_operand.vmem [shape: f32[128,1], index: 2, kind: input, shape index: {}]   ;;  %s1232_s3 = inlined_call_operand.vmem [shape: bf16[128,128], index: 3, kind: input, shape index: {}]   ;;  %s1233_s4 = inlined_call_operand.vmem [shape: f32[128,1], index: 4, kind: input, shape index: {}]   ;;  %s1234_s5 = inlined_call_operand.vmem [shape: f32[128,1], index: 5, kind: input, shape index: {}]   ;;  %s1235_s6 = inlined_call_operand.<no memory space> [shape: f32[1,1], index: 6, kind: input, shape index: {}]   ;;  %s1236_s7 = inlined_call_operand.hbm [shape: f32[1,8], index: 7, kind: output, shape index: {}]  }
   0x1   :  { %v47_v0 = vld [vmem:[%s1231_s2] sm:$0xff]  ;;  %v49_v2 = vld [vmem:[%s1231_s2 + $0x10] sm:$0xff]  ;;  %899 = vset.pattern.permute.xlu0 %v945_v3  ;;  %900 = vset.pattern.permute.xlu1 %v945_v3  ;;  %v48_v5 = vld [vmem:[%s1231_s2 + $0x8] sm:$0xff] }
   0x2   :  { %v29_v1 = vld [vmem:[%s1229_s0] sm:$0xff]  ;;  %65 = vperm.xlu0 %899, %v47_v0   ;;  %75 = vperm.xlu1 %900, %v49_v2   ;;  %v50_v8 = vld [vmem:[%s1231_s2 + $0x18] sm:$0xff]  ;;  %v902_v10 = vld [vmem:[%s1230_s1 + $0x8] sm:$0xff]  }
   0x3   :  { %v30_v4 = vpack.c.bf16 %v29_v1, %v29_v1  ;;  %v901_v6 = vld [vmem:[%s1230_s1] sm:$0xff]   ;;  %v52_v11 = vld [vmem:[%s1231_s2 + $0x28] sm:$0xff]  ;;  %v903_v12 = vld [vmem:[%s1230_s1 + $0x10] sm:$0xff]  }
   0x4   :  { %832 = vmatprep.mubr.msk.bf16.mxu0 %vm183_vm0, %v901_v6  ;;  %v51_v9 = vld [vmem:[%s1231_s2 + $0x20] sm:$0xff]  ;;  %v53_v13 = vld [vmem:[%s1231_s2 + $0x30] sm:$0xff]  ;;  %v54_v14 = vld [vmem:[%s1231_s2 + $0x38] sm:$0xff] }
   0x5   :  { %896 = vmatprep.subr.msk.bf16.mxu0 %vm183_vm0, %v30_v4  ;;  %v209_v7 = vsel %vm183_vm0, %v30_v4, 0  ;;  %v55_v15 = vld [vmem:[%s1231_s2 + $0x40] sm:$0xff]  ;;  %v904_v16 = vld [vmem:[%s1230_s1 + $0x18] sm:$0xff]   ;;  %v56_v17 = vld [vmem:[%s1231_s2 + $0x48] sm:$0xff] }
   0x6   :  { %831 = vmatpush3.bf16.xpose.msra.mxu0 %v209_v7  ;;  %70 = vperm.xlu0 %899, %v48_v5   ;;  %v905_v18 = vld [vmem:[%s1230_s1 + $0x20] sm:$0xff]   ;;  %v57_v19 = vld [vmem:[%s1231_s2 + $0x50] sm:$0xff]  ;;  %v58_v20 = vld [vmem:[%s1231_s2 + $0x58] sm:$0xff] }
   0x7   :  { %80 = vperm.xlu1 %900, %v50_v8   ;;  %v59_v21 = vld [vmem:[%s1231_s2 + $0x60] sm:$0xff]  ;;  %v906_v22 = vld [vmem:[%s1230_s1 + $0x28] sm:$0xff]   ;;  %v907_v24 = vld [vmem:[%s1230_s1 + $0x30] sm:$0xff]  }
   0x8   :  { %v60_v23 = vld [vmem:[%s1231_s2 + $0x68] sm:$0xff]  ;;  %v61_v25 = vld [vmem:[%s1231_s2 + $0x70] sm:$0xff]  ;;  %v62_v26 = vld [vmem:[%s1231_s2 + $0x78] sm:$0xff] }
   0xa   :  { %85 = vperm.xlu0 %899, %v51_v9  }
   0xb   :  { %90 = vperm.xlu1 %900, %v52_v11  }
   0xd   :  { %833 = vmatmul.mubr.msk.bf16.vlgmr.msra.gmra.mrb[0].mxu0 %vm183_vm0, %v902_v10 }
   0xe   :  { %836 = vmatprep.mubr.msk.bf16.mxu0 %vm183_vm0, %v903_v12  ;;  %95 = vperm.xlu0 %899, %v53_v13  }
   0xf   :  { %100 = vperm.xlu1 %900, %v54_v14  }
  0x12   :  { %105 = vperm.xlu0 %899, %v55_v15  }
  0x13   :  { %110 = vperm.xlu1 %900, %v56_v17  }
  0x15   :  { %837 = vmatmul.mubr.msk.bf16.gmra.mrb[4].mxu0 %vm183_vm0, %v904_v16 }
  0x16   :  { %840 = vmatprep.mubr.msk.bf16.mxu0 %vm183_vm0, %v905_v18  ;;  %115 = vperm.xlu0 %899, %v57_v19  }
  0x17   :  { %120 = vperm.xlu1 %900, %v58_v20  }
  0x1a   :  { %125 = vperm.xlu0 %899, %v59_v21  }
  0x1b   :  { %130 = vperm.xlu1 %900, %v60_v23  }
  0x1d   :  { %841 = vmatmul.mubr.msk.bf16.gmra.mrb[8].mxu0 %vm183_vm0, %v906_v22 }
  0x1e   :  { %844 = vmatprep.mubr.msk.bf16.mxu0 %vm183_vm0, %v907_v24 }
  0x1f   :  { %13 = vsyncpa [#allocation4], 0  ;;  %135 = vperm.xlu0 %899, %v61_v25   ;;  %140 = vperm.xlu1 %900, %v62_v26   ;;  %v348_v27 = vld [vmem:[%s1233_s4] sm:$0xff]  ;;  %v908_v28 = vld [vmem:[%s1230_s1 + $0x38] sm:$0xff]   ;;  %vm717_vm1 = vcmask 64512   ;;  %s946_s27 = smov [#allocation3]  }
  0x20   :  { %v349_v29 = vld [vmem:[%s1233_s4 + $0x8] sm:$0xff]  ;;  %v350_v30 = vld [vmem:[%s1233_s4 + $0x10] sm:$0xff]  ;;  %v351_v31 = vld [vmem:[%s1233_s4 + $0x18] sm:$0xff]  ;;  %s772_s28 = sshll.u32 %s946_s27, 4  ;;  %vm764_vm2 = vcmask 57344   ;;  %s773_s28 = int_to_ptr.vmem [resolvable:$true] %s772_s28 }
  0x21   :  { %v605_v32 = vld [vmem:[%s1234_s5] sm:$0xff]  ;;  %v606_v33 = vld [vmem:[%s1234_s5 + $0x8] sm:$0xff]  ;;  %v607_v35 = vld [vmem:[%s1234_s5 + $0x10] sm:$0xff]  ;;  %s921_s29 = scalar_lea.vmem %s773_s28, 16  ;;  %s925_s2 = scalar_lea.vmem %s773_s28, 32 }
  0x22   :  { %v352_v34 = vld [vmem:[%s1233_s4 + $0x20] sm:$0xff]  ;;  %v353_v36 = vld [vmem:[%s1233_s4 + $0x28] sm:$0xff]  ;;  %v608_v37 = vld [vmem:[%s1234_s5 + $0x18] sm:$0xff]  ;;  %p922_p0 = scmp.ne.s32.totalorder %s773_s28, %s921_s29  ;;  %p926_p1 = scmp.lt.s32.totalorder %s773_s28, %s773_s28 }
  0x23   :  { %366 = vperm.xlu0 %899, %v348_v27   ;;  %371 = vperm.xlu1 %900, %v349_v29   ;;  %v354_v38 = vld [vmem:[%s1233_s4 + $0x30] sm:$0xff]  ;;  %v609_v39 = vld [vmem:[%s1234_s5 + $0x20] sm:$0xff]  ;;  %v355_v40 = vld [vmem:[%s1233_s4 + $0x38] sm:$0xff]  ;;  %p927_p2 = scmp.lt.s32.totalorder %s925_s2, %s921_s29 }
  0x24   :  { %v610_v41 = vld [vmem:[%s1234_s5 + $0x28] sm:$0xff]  ;;  %v356_v42 = vld [vmem:[%s1233_s4 + $0x40] sm:$0xff]  ;;  %v611_v43 = vld [vmem:[%s1234_s5 + $0x30] sm:$0xff] }
  0x25   :  { %845 = vmatmul.mubr.msk.bf16.gmra.mrb[12].mxu0 %vm183_vm0, %v908_v28  ;;  %v357_v44 = vld [vmem:[%s1233_s4 + $0x48] sm:$0xff]  ;;  %v612_v45 = vld [vmem:[%s1234_s5 + $0x38] sm:$0xff]  ;;  %v358_v46 = vld [vmem:[%s1233_s4 + $0x50] sm:$0xff]  ;;  %p928_p3 = por %p927_p2, %p926_p1 }
  0x26   :  { %v613_v47 = vld [vmem:[%s1234_s5 + $0x40] sm:$0xff]  ;;  %v359_v48 = vld [vmem:[%s1233_s4 + $0x58] sm:$0xff]  ;;  %v614_v49 = vld [vmem:[%s1234_s5 + $0x48] sm:$0xff] }
  0x27   :  { %376 = vperm.xlu0 %899, %v350_v30   ;;  %381 = vperm.xlu1 %900, %v351_v31   ;;  %v360_v50 = vld [vmem:[%s1233_s4 + $0x60] sm:$0xff]  ;;  %v615_v51 = vld [vmem:[%s1234_s5 + $0x50] sm:$0xff]  ;;  %v361_v52 = vld [vmem:[%s1233_s4 + $0x68] sm:$0xff]  ;;  %p929_p4 = pnand %p928_p3, %p922_p0 }
  0x28   :  { %v616_v53 = vld [vmem:[%s1234_s5 + $0x58] sm:$0xff]  ;;  %v362_v54 = vld [vmem:[%s1233_s4 + $0x70] sm:$0xff]  ;;  %v617_v55 = vld [vmem:[%s1234_s5 + $0x60] sm:$0xff] }
  0x29   :  { %v363_v56 = vld [vmem:[%s1233_s4 + $0x78] sm:$0xff]  ;;  %v618_v57 = vld [vmem:[%s1234_s5 + $0x68] sm:$0xff]  ;;  %v619_v58 = vld [vmem:[%s1234_s5 + $0x70] sm:$0xff] }
  0x2a   :  { %v620_v59 = vld [vmem:[%s1234_s5 + $0x78] sm:$0xff]  ;;  %v909_v60 = vld [vmem:[%s1232_s3] sm:$0xff]   ;;  %v910_v61 = vld [vmem:[%s1232_s3 + $0x10] sm:$0xff]  }
  0x2b   :  { %623 = vperm.xlu0 %899, %v605_v32   ;;  %628 = vperm.xlu1 %900, %v606_v33  }
  0x2c   :  { %864 = vmatprep.mubr.bf16.mxu0 %v909_v60  ;;  %868 = vmatprep.mubr.bf16.mxu1 %v910_v61 }
  0x2f   :  { %386 = vperm.xlu0 %899, %v352_v34   ;;  %633 = vperm.xlu1 %900, %v607_v35  }
  0x33   :  { %391 = vperm.xlu0 %899, %v353_v36   ;;  %638 = vperm.xlu1 %900, %v608_v37  }
  0x37   :  { %396 = vperm.xlu0 %899, %v354_v38   ;;  %643 = vperm.xlu1 %900, %v609_v39  }
  0x3b   :  { %401 = vperm.xlu0 %899, %v355_v40   ;;  %648 = vperm.xlu1 %900, %v610_v41  }
  0x3f   :  { %406 = vperm.xlu0 %899, %v356_v42   ;;  %653 = vperm.xlu1 %900, %v611_v43  }
  0x43   :  { %411 = vperm.xlu0 %899, %v357_v44   ;;  %658 = vperm.xlu1 %900, %v612_v45  }
  0x47   :  { %416 = vperm.xlu0 %899, %v358_v46   ;;  %663 = vperm.xlu1 %900, %v613_v47  }
  0x4b   :  { %421 = vperm.xlu0 %899, %v359_v48   ;;  %668 = vperm.xlu1 %900, %v614_v49  }
  0x4f   :  { %426 = vperm.xlu0 %899, %v360_v50   ;;  %673 = vperm.xlu1 %900, %v615_v51  }
  0x53   :  { %431 = vperm.xlu0 %899, %v361_v52   ;;  %678 = vperm.xlu1 %900, %v616_v53  }
  0x57   :  { %436 = vperm.xlu0 %899, %v362_v54   ;;  %683 = vperm.xlu1 %900, %v617_v55  }
  0x5b   :  { %441 = vperm.xlu0 %899, %v363_v56   ;;  %688 = vperm.xlu1 %900, %v618_v57  }
  0x5f   :  { %693 = vperm.xlu0 %899, %v619_v58   ;;  %698 = vperm.xlu1 %900, %v620_v59  }
  0x81   :  { %v66_v62 = vpop.permute.xlu0 %65  ;;  %v76_v63 = vpop.permute.xlu1 %75 }
  0x85   :  { %v71_v0 = vpop.permute.xlu0 %70 }
  0x86   :  { %v81_v1 = vpop.permute.xlu1 %80 }
  0x89   :  { %v86_v2 = vpop.permute.xlu0 %85 }
  0x8a   :  { %v91_v3 = vpop.permute.xlu1 %90 }
  0x8d   :  { %v96_v4 = vpop.permute.xlu0 %95 }
  0x8e   :  { %v101_v8 = vpop.permute.xlu1 %100 }
  0x91   :  { %v106_v16 = vpop.permute.xlu0 %105 }
  0x92   :  { %v111_v20 = vpop.permute.xlu1 %110 }
  0x95   :  { %v116_v29 = vpop.permute.xlu0 %115 }
  0x96   :  { %v121_v33 = vpop.permute.xlu1 %120 }
  0x99   :  { %v126_v41 = vpop.permute.xlu0 %125 }
  0x9a   :  { %v131_v46 = vpop.permute.xlu1 %130 }
  0x9e   :  { %v136_v53 = vpop.permute.xlu0 %135  ;;  %v141_v58 = vpop.permute.xlu1 %140 }
  0xe0   :  { %v834_v5 = vpop.f32.mrb[0].mxu0 }
  0xe1   :  { %v254_v6 = vadd.f32 %v834_v5, %v76_v63  ;;  %v245_v7 = vpop.f32.mrb[1].mxu0 }
  0xe2   :  { %v246_v9 = vadd.f32 %v245_v7, %v66_v62  ;;  %v835_v10 = vpop.f32.mrb[2].mxu0  ;;  %v912_v7 = vld [vmem:[%s1232_s3 + $0x18] sm:$0xff]  }
  0xe3   :  { %v257_v11 = vadd.f32 %v835_v10, %v81_v1  ;;  %v248_v12 = vpop.f32.mrb[3].mxu0  ;;  %v310_v14 = vmax.f32 %v254_v6, 0.0  ;;  %v911_v6 = vld [vmem:[%s1232_s3 + $0x8] sm:$0xff]   ;;  %v915_v10 = vld [vmem:[%s1232_s3 + $0x30] sm:$0xff]  }
  0xe4   :  { %v249_v13 = vadd.f32 %v248_v12, %v71_v0  ;;  %v308_v17 = vmax.f32 %v246_v9, 0.0  ;;  %v914_v9 = vld [vmem:[%s1232_s3 + $0x28] sm:$0xff]   ;;  %v367_v12 = vpop.permute.xlu0 %366 }
  0xe5   :  { %v311_v15 = vmax.f32 %v257_v11, 0.0  ;;  %v916_v11 = vld [vmem:[%s1232_s3 + $0x38] sm:$0xff]  }
  0xe6   :  { %v309_v18 = vmax.f32 %v249_v13, 0.0  ;;  %v372_v13 = vpop.permute.xlu1 %371 }
  0xe7   :  { %v325_v19 = vpack.c.bf16 %v311_v15, %v310_v14 }
  0xe8   :  { %v324_v21 = vpack.c.bf16 %v309_v18, %v308_v17  ;;  %v838_v22 = vpop.f32.mrb[4].mxu0  ;;  %v377_v14 = vpop.permute.xlu0 %376 }
  0xe9   :  { %v270_v23 = vadd.f32 %v838_v22, %v96_v4  ;;  %v261_v24 = vpop.f32.mrb[5].mxu0 }
  0xea   :  { %v262_v25 = vadd.f32 %v261_v24, %v86_v2  ;;  %v839_v26 = vpop.f32.mrb[6].mxu0  ;;  %848 = vmatprep.subr.bf16.mxu0 %v324_v21  ;;  %880 = vmatprep.subr.bf16.mxu1 %v324_v21  ;;  %v382_v15 = vpop.permute.xlu1 %381 }
  0xeb   :  { %v273_v27 = vadd.f32 %v839_v26, %v101_v8  ;;  %v264_v28 = vpop.f32.mrb[7].mxu0  ;;  %849 = vmatpush3.bf16.msra.mxu0 %v324_v21  ;;  %888 = vmatpush3.bf16.msra.mxu1 %v324_v21  ;;  %v314_v31 = vmax.f32 %v270_v23, 0.0  ;;  %v913_v8 = vld [vmem:[%s1232_s3 + $0x20] sm:$0xff]  }
  0xec   :  { %v265_v30 = vadd.f32 %v264_v28, %v91_v3  ;;  %850 = vmatprep.subr.bf16.mxu0 %v325_v19  ;;  %881 = vmatprep.subr.bf16.mxu1 %v325_v19  ;;  %v312_v34 = vmax.f32 %v262_v25, 0.0 }
  0xed   :  { %v315_v32 = vmax.f32 %v273_v27, 0.0 }
  0xee   :  { %v313_v35 = vmax.f32 %v265_v30, 0.0  ;;  %v629_v17 = vpop.permute.xlu1 %628 }
  0xef   :  { %v327_v36 = vpack.c.bf16 %v315_v32, %v314_v31  ;;  %851 = vmatpush3.bf16.msra.mxu0 %v325_v19  ;;  %889 = vmatpush3.bf16.msra.mxu1 %v325_v19 }
  0xf0   :  { %v326_v37 = vpack.c.bf16 %v313_v35, %v312_v34  ;;  %v842_v38 = vpop.f32.mrb[8].mxu0 }
  0xf1   :  { %v286_v39 = vadd.f32 %v842_v38, %v116_v29  ;;  %v277_v40 = vpop.f32.mrb[9].mxu0 }
  0xf2   :  { %v278_v42 = vadd.f32 %v277_v40, %v106_v16  ;;  %v843_v43 = vpop.f32.mrb[10].mxu0  ;;  %852 = vmatprep.subr.bf16.mxu0 %v326_v37  ;;  %882 = vmatprep.subr.bf16.mxu1 %v326_v37  ;;  %v624_v16 = vpop.permute.xlu0 %623 }
  0xf3   :  { %v289_v44 = vadd.f32 %v843_v43, %v121_v33  ;;  %v280_v45 = vpop.f32.mrb[11].mxu0  ;;  %853 = vmatpush3.bf16.msra.mxu0 %v326_v37  ;;  %890 = vmatpush3.bf16.msra.mxu1 %v326_v37  ;;  %v318_v48 = vmax.f32 %v286_v39, 0.0  ;;  %v634_v19 = vpop.permute.xlu1 %633 }
  0xf4   :  { %v281_v47 = vadd.f32 %v280_v45, %v111_v20  ;;  %854 = vmatprep.subr.bf16.mxu0 %v327_v36  ;;  %883 = vmatprep.subr.bf16.mxu1 %v327_v36  ;;  %v316_v50 = vmax.f32 %v278_v42, 0.0 }
  0xf5   :  { %v319_v49 = vmax.f32 %v289_v44, 0.0 }
  0xf6   :  { %v317_v51 = vmax.f32 %v281_v47, 0.0  ;;  %v387_v18 = vpop.permute.xlu0 %386 }
  0xf7   :  { %v329_v52 = vpack.c.bf16 %v319_v49, %v318_v48  ;;  %855 = vmatpush3.bf16.msra.mxu0 %v327_v36  ;;  %891 = vmatpush3.bf16.msra.mxu1 %v327_v36  ;;  %v639_v21 = vpop.permute.xlu1 %638 }
  0xf8   :  { %v328_v54 = vpack.c.bf16 %v317_v51, %v316_v50  ;;  %v846_v55 = vpop.f32.mrb[12].mxu0 }
  0xf9   :  { %v302_v56 = vadd.f32 %v846_v55, %v136_v53  ;;  %v293_v57 = vpop.f32.mrb[13].mxu0 }
  0xfa   :  { %v294_v59 = vadd.f32 %v293_v57, %v126_v41  ;;  %v847_v60 = vpop.f32.mrb[14].mxu0  ;;  %856 = vmatprep.subr.bf16.mxu0 %v328_v54  ;;  %884 = vmatprep.subr.bf16.mxu1 %v328_v54  ;;  %v392_v20 = vpop.permute.xlu0 %391 }
  0xfb   :  { %v305_v61 = vadd.f32 %v847_v60, %v141_v58  ;;  %v296_v62 = vpop.f32.mrb[15].mxu0  ;;  %857 = vmatpush3.bf16.msra.mxu0 %v328_v54  ;;  %892 = vmatpush3.bf16.msra.mxu1 %v328_v54  ;;  %v322_v0 = vmax.f32 %v302_v56, 0.0  ;;  %v644_v23 = vpop.permute.xlu1 %643 }
  0xfc   :  { %v297_v63 = vadd.f32 %v296_v62, %v131_v46  ;;  %858 = vmatprep.subr.bf16.mxu0 %v329_v52  ;;  %885 = vmatprep.subr.bf16.mxu1 %v329_v52  ;;  %v320_v2 = vmax.f32 %v294_v59, 0.0 }
  0xfd   :  { %v323_v1 = vmax.f32 %v305_v61, 0.0 }
  0xfe   :  { %v321_v3 = vmax.f32 %v297_v63, 0.0  ;;  %v397_v22 = vpop.permute.xlu0 %396 }
  0xff   :  { %v331_v4 = vpack.c.bf16 %v323_v1, %v322_v0  ;;  %859 = vmatpush3.bf16.msra.mxu0 %v329_v52  ;;  %893 = vmatpush3.bf16.msra.mxu1 %v329_v52  ;;  %v649_v25 = vpop.permute.xlu1 %648 }
 0x100   :  { %v330_v5 = vpack.c.bf16 %v321_v3, %v320_v2 }
 0x102   :  { %860 = vmatprep.subr.bf16.mxu0 %v330_v5  ;;  %886 = vmatprep.subr.bf16.mxu1 %v330_v5  ;;  %v402_v24 = vpop.permute.xlu0 %401 }
 0x103   :  { %861 = vmatpush3.bf16.msra.mxu0 %v330_v5  ;;  %894 = vmatpush3.bf16.msra.mxu1 %v330_v5  ;;  %v654_v27 = vpop.permute.xlu1 %653 }
 0x104   :  { %862 = vmatprep.subr.bf16.mxu0 %v331_v4  ;;  %887 = vmatprep.subr.bf16.mxu1 %v331_v4 }
 0x106   :  { %v407_v26 = vpop.permute.xlu0 %406 }
 0x107   :  { %863 = vmatpush3.bf16.msra.mxu0 %v331_v4  ;;  %895 = vmatpush3.bf16.msra.mxu1 %v331_v4  ;;  %v659_v29 = vpop.permute.xlu1 %658 }
 0x10a   :  { %865 = vmatmul.mubr.bf16.vlgmr.msra.gmra.mrb[16].mxu0 %v911_v6  ;;  %869 = vmatmul.mubr.bf16.vlgmr.msra.gmra.mrb[0].mxu1 %v912_v7  ;;  %v412_v28 = vpop.permute.xlu0 %411 }
 0x10b   :  { %872 = vmatprep.mubr.bf16.mxu1 %v913_v8  ;;  %v1192_v31 = vpop.permute.xlu1 %663 }
 0x10e   :  { %v417_v30 = vpop.permute.xlu0 %416 }
 0x10f   :  { %v1194_v33 = vpop.permute.xlu1 %668 }
 0x112   :  { %873 = vmatmul.mubr.bf16.gmra.mrb[4].mxu1 %v914_v9  ;;  %v422_v32 = vpop.permute.xlu0 %421 }
 0x113   :  { %876 = vmatprep.mubr.bf16.mxu1 %v915_v10  ;;  %v674_v59 = vpop.permute.xlu1 %673 }
 0x116   :  { %v427_v53 = vpop.permute.xlu0 %426 }
 0x11a   :  { %877 = vmatmul.mubr.bf16.gmra.mrb[8].mxu1 %v916_v11  ;;  %v432_v9 = vpop.permute.xlu0 %431 }
 0x1dd   :  { %v866_v34 = vpop.f32.mrb[16].mxu0  ;;  %v870_v35 = vpop.f32.mrb[0].mxu1 }
 0x1de   :  { %v535_v36 = vadd.f32 %v866_v34, %v377_v14  ;;  %v526_v37 = vpop.f32.mrb[17].mxu0  ;;  %v542_v38 = vpop.f32.mrb[1].mxu1  ;;  %v551_v55 = vadd.f32 %v870_v35, %v397_v22 }
 0x1df   :  { %v527_v39 = vadd.f32 %v526_v37, %v367_v12  ;;  %v867_v40 = vpop.f32.mrb[18].mxu0  ;;  %v871_v41 = vpop.f32.mrb[2].mxu1  ;;  %v543_v47 = vadd.f32 %v542_v38, %v387_v18 }
 0x1e0   :  { %v538_v42 = vadd.f32 %v867_v40, %v382_v15  ;;  %v529_v43 = vpop.f32.mrb[19].mxu0  ;;  %v545_v44 = vpop.f32.mrb[3].mxu1  ;;  %v591_v45 = vmax.f32 %v535_v36, 0.0  ;;  %v554_v60 = vadd.f32 %v871_v41, %v402_v24  ;;  %v595_v6 = vmax.f32 %v551_v55, 0.0 }
 0x1e1   :  { %v589_v46 = vmax.f32 %v527_v39, 0.0  ;;  %v530_v48 = vadd.f32 %v529_v43, %v372_v13  ;;  %v546_v52 = vadd.f32 %v545_v44, %v392_v20  ;;  %v593_v56 = vmax.f32 %v543_v47, 0.0  ;;  %v679_v15 = vpop.permute.xlu1 %678  ;;  %v437_v37 = vpop.permute.xlu0 %436 }
 0x1e2   :  { %v592_v50 = vmax.f32 %v538_v42, 0.0  ;;  %v703_v54 = vmul.f32 %v634_v19, %v591_v45  ;;  %v596_v12 = vmax.f32 %v554_v60, 0.0 }
 0x1e3   :  { %v701_v49 = vmul.f32 %v624_v16, %v589_v46  ;;  %v590_v51 = vmax.f32 %v530_v48, 0.0  ;;  %v594_v1 = vmax.f32 %v546_v52, 0.0  ;;  %v705_v7 = vmul.f32 %v644_v23, %v593_v56 }
 0x1e4   :  { %v704_v63 = vmul.f32 %v639_v21, %v592_v50  ;;  %v721_v5 = vsel %vm717_vm1, %v703_v54, 0.0  ;;  %v708_v34 = vmul.f32 %v659_v29, %v596_v12 }
 0x1e5   :  { %v702_v57 = vmul.f32 %v629_v17, %v590_v51  ;;  %v874_v58 = vpop.f32.mrb[4].mxu1  ;;  %v718_v62 = vsel %vm717_vm1, %v701_v49, 0.0  ;;  %v706_v13 = vmul.f32 %v649_v25, %v594_v1  ;;  %v707_v17 = vmul.f32 %v654_v27, %v595_v6  ;;  %v442_v49 = vpop.permute.xlu0 %441 }
 0x1e6   :  { %v558_v61 = vpop.f32.mrb[5].mxu1  ;;  %v723_v11 = vsel %vm717_vm1, %v704_v63, 0.0  ;;  %v725_v18 = vsel %vm717_vm1, %v705_v7, 0.0  ;;  %v567_v19 = vadd.f32 %v874_v58, %v417_v30  ;;  %v684_v30 = vpop.permute.xlu1 %683  ;;  %v731_v42 = vsel %vm717_vm1, %v708_v34, 0.0 }
 0x1e7   :  { %v719_v0 = vsel %vm717_vm1, %v702_v57, 0.0  ;;  %v875_v2 = vpop.f32.mrb[6].mxu1  ;;  %v559_v8 = vadd.f32 %v558_v61, %v407_v26  ;;  %v727_v23 = vsel %vm717_vm1, %v706_v13, 0.0 }
 0x1e8   :  { %v720_v3 = vadd.f32 %v719_v0, %v718_v62  ;;  %v561_v4 = vpop.f32.mrb[7].mxu1  ;;  %v570_v26 = vadd.f32 %v875_v2, %v422_v32  ;;  %v599_v39 = vmax.f32 %v567_v19, 0.0 }
 0x1e9   :  { %v562_v14 = vadd.f32 %v561_v4, %v412_v28  ;;  %v597_v20 = vmax.f32 %v559_v8, 0.0  ;;  %v729_v28 = vsel %vm717_vm1, %v707_v17, 0.0  ;;  %v694_v62 = vpop.permute.xlu0 %693 }
 0x1ea   :  { %v722_v10 = vadd.f32 %v721_v5, %v720_v3  ;;  %v600_v43 = vmax.f32 %v570_v26, 0.0  ;;  %v711_v45 = vmul.f32 %v674_v59, %v599_v39  ;;  %v689_v54 = vpop.permute.xlu1 %688 }
 0x1eb   :  { %v598_v35 = vmax.f32 %v562_v14, 0.0  ;;  %v709_v27 = vmul.f32 %v1192_v31, %v597_v20 }
 0x1ec   :  { %v724_v16 = vadd.f32 %v723_v11, %v722_v10  ;;  %v712_v51 = vmul.f32 %v679_v15, %v600_v43  ;;  %v737_v56 = vsel %vm717_vm1, %v711_v45, 0.0 }
 0x1ed   :  { %v878_v21 = vpop.f32.mrb[8].mxu1  ;;  %v710_v29 = vmul.f32 %v1194_v33, %v598_v35  ;;  %v733_v46 = vsel %vm717_vm1, %v709_v27, 0.0 }
 0x1ee   :  { %v726_v22 = vadd.f32 %v725_v18, %v724_v16  ;;  %v574_v24 = vpop.f32.mrb[9].mxu1  ;;  %v583_v47 = vadd.f32 %v878_v21, %v437_v37  ;;  %v739_v59 = vsel %vm717_vm1, %v712_v51, 0.0  ;;  %v699_v2 = vpop.permute.xlu1 %698  ;;  %v756_v16 = vstv %s1235_s6 }
 0x1ef   :  { %v879_v36 = vpop.f32.mrb[10].mxu1  ;;  %v575_v40 = vadd.f32 %v574_v24, %v427_v53  ;;  %v735_v31 = vsel %vm717_vm1, %v710_v29, 0.0 }
 0x1f0   :  { %v728_v38 = vadd.f32 %v727_v23, %v726_v22  ;;  %v577_v25 = vpop.f32.mrb[11].mxu1  ;;  %v586_v52 = vadd.f32 %v879_v36, %v442_v49  ;;  %v603_v57 = vmax.f32 %v583_v47, 0.0 }
 0x1f1   :  { %v578_v44 = vadd.f32 %v577_v25, %v432_v9  ;;  %v601_v48 = vmax.f32 %v575_v40, 0.0 }
 0x1f2   :  { %v730_v41 = vadd.f32 %v729_v28, %v728_v38  ;;  %v604_v60 = vmax.f32 %v586_v52, 0.0  ;;  %v715_v0 = vmul.f32 %v694_v62, %v603_v57 }
 0x1f3   :  { %v602_v53 = vmax.f32 %v578_v44, 0.0  ;;  %v713_v33 = vmul.f32 %v684_v30, %v601_v48 }
 0x1f4   :  { %v732_v32 = vadd.f32 %v731_v42, %v730_v41  ;;  %v716_v4 = vmul.f32 %v699_v2, %v604_v60  ;;  %v745_v7 = vsel %vm717_vm1, %v715_v0, 0.0 }
 0x1f5   :  { %v714_v61 = vmul.f32 %v689_v54, %v602_v53  ;;  %v741_v1 = vsel %vm717_vm1, %v713_v33, 0.0 }
 0x1f6   :  { %v734_v50 = vadd.f32 %v733_v46, %v732_v32  ;;  %v747_v9 = vsel %vm717_vm1, %v716_v4, 0.0 }
 0x1f7   :  { %v743_v5 = vsel %vm717_vm1, %v714_v61, 0.0 }
 0x1f8   :  { %v736_v55 = vadd.f32 %v735_v31, %v734_v50 }
 0x1fa   :  { %v738_v58 = vadd.f32 %v737_v56, %v736_v55 }
 0x1fc   :  { %v740_v63 = vadd.f32 %v739_v59, %v738_v58 }
 0x1fe   :  { %v742_v3 = vadd.f32 %v741_v1, %v740_v63 }
 0x200   :  { %v744_v6 = vadd.f32 %v743_v5, %v742_v3 }
 0x202   :  { %v746_v8 = vadd.f32 %v745_v7, %v744_v6 }
 0x204   :  { %v748_v10 = vadd.f32 %v747_v9, %v746_v8 }
 0x206   :  { %v749_v11 = vrot.slane %v748_v10, 4 }
 0x208   :  { %v750_v12 = vadd.f32 %v749_v11, %v748_v10 }
 0x20a   :  { %v751_v13 = vrot.slane %v750_v12, 2 }
 0x20c   :  { %v752_v14 = vadd.f32 %v751_v13, %v750_v12 }
 0x20e   :  { %v753_v15 = vrot.slane %v752_v14, 1 }
 0x210   :  { %v754_v17 = vadd.f32 %v753_v15, %v752_v14 }
 0x212   :  { %v757_v18 = vadd.f32 %v756_v16, %v754_v17 }
 0x214   :  { %v804_v19 = vmul.f32 -1.442695, %v757_v18 }
 0x216   :  { %917 = vpow2.f32 %v804_v19 }
 0x220   :  { %v918_v20 = vpop.eup %917 }
 0x221   :  { %v761_v21 = vadd.f32 1.0, %v918_v20 }
 0x223   :  { %919 = vrcp.f32 %v761_v21 }
 0x22d   :  { %v920_v22 = vpop.eup %919 }
 0x22e   :  { %765 = vst.msk [vmem:[#allocation3] sm:$0x1] %vm764_vm2, %v920_v22 }
 0x22f   :  { %932 = shalt.err (!%p929_p4)
}
 0x230   :  { %s933_s8 = scalar_lea.hbm %s1236_s7, 16 }
 0x231   :  { %p934_p5 = scmp.ne.s32.totalorder %s1236_s7, %s933_s8  ;;  %p937_p6 = scmp.lt.u32.totalorder %s933_s8, %s1236_s7 }
 0x233   :  { %p939_p7 = pnand %p937_p6, %p934_p5 }
 0x235   :  { %942 = shalt.err (!%p939_p7)
}
 0x236   :  { %775 = dma.vmem_to_hbm [thread:$0]  %s773_s28, 16, %s1236_s7, [#allocation4]  }
 0x237   :  { %943 = dma.done.wait [#allocation4], 16  }
 0x238   :  { %944 = vsyncadd [#allocation4], 4294967280 }
 0x239   :  { %779 = vsyncpa [#allocation4], 1 }

</bundles_post_ra>
